<compile_context>
chip_gen: v6e
topology: v6e:2x2x1
jax: 0.10.0
libtpu: 0.0.40
codegen_flags: <defaults>
</compile_context>

<pallas_src>
import jax
import jax.numpy as jnp
from jax import lax
from jax.experimental import pallas as pl
from jax.experimental.pallas import tpu as pltpu

HIDDEN = 128
BN_EPS = 1e-5


def _bn_relu(h, gamma, beta):
    # BatchNorm1d (training mode): biased variance over the batch axis.
    # One-pass variance (clamped >= 0) + gamma folded into the rsqrt scale.
    mu = jnp.mean(h, axis=0, keepdims=True)
    var = jnp.maximum(jnp.mean(h * h, axis=0, keepdims=True) - mu * mu, 0.0)
    scale = gamma * lax.rsqrt(var + BN_EPS)
    return jnp.maximum((h - mu) * scale + beta, 0.0)


def actor_kernel(x_ref, slab_ref, w23_ref, o_ref):
    # x:    (B, S)  f32
    # slab: (16, H) f32 = [w1 (S rows), w4^T, g1, be1, g2, be2, g3, be3,
    #                      b4 (lane-broadcast), pad...]
    # w23:  (H, 2H) bf16 = [w2 | w3]
    x = x_ref[...]
    slab = slab_ref[...]
    S = x.shape[1]
    H = w23_ref.shape[0]
    A = o_ref.shape[1]

    w1 = slab[0:S, :]                     # (S, H)
    w4t = slab[S:S + 1, :]                # (1, H)
    g1, be1 = slab[S + 1:S + 2, :], slab[S + 2:S + 3, :]
    g2, be2 = slab[S + 3:S + 4, :], slab[S + 4:S + 5, :]
    g3, be3 = slab[S + 5:S + 6, :], slab[S + 6:S + 7, :]
    b4 = slab[S + 7:S + 8, 0:A]           # (1, A)

    # fc1 (K = state_dim, tiny): S broadcast FMAs on the VPU, skip the MXU.
    # (bias b1 dropped: cancels exactly under training-mode BN)
    h = x[:, 0:1] * w1[0:1, :]
    for k in range(1, S):
        h = h + x[:, k:k + 1] * w1[k:k + 1, :]
    h = _bn_relu(h, g1, be1)

    # fc2 / fc3: 128x128 MXU matmuls, bf16 operands, f32 accumulation.
    h = jnp.dot(h.astype(jnp.bfloat16), w23_ref[:, 0:H],
                preferred_element_type=jnp.float32)
    h = _bn_relu(h, g2, be2)

    h = jnp.dot(h.astype(jnp.bfloat16), w23_ref[:, H:2 * H],
                preferred_element_type=jnp.float32)
    h = _bn_relu(h, g3, be3)

    # fc4 (N = action_dim = 1): VPU multiply + lane (XLU) reduction instead of
    # a lane-sparse MXU matmul.
    logits = jnp.sum(h * w4t, axis=-1, keepdims=True) + b4

    # Exact sigmoid (tiny (B,1) tile; no approx-reciprocal bucket-flip risk).
    y = 1.0 / (1.0 + jnp.exp(-logits))

    # Quantize-up for batch element index 1 only (x[1] in the PyTorch code;
    # valid because action_dim == 1 so x[1] is a scalar).
    q = jnp.where(y < 0.25, 0.25,
        jnp.where(y < 0.5, 0.5,
        jnp.where(y < 0.75, 0.75, 1.0)))
    rows = lax.broadcasted_iota(jnp.int32, y.shape, 0)
    o_ref[...] = jnp.where(rows == 1, q, y).astype(o_ref.dtype)


def prepare_params(params):
    """One-time packing (hoisted out of the forward path per perf review).

    Returns (w23_bf16 (H,2H), slab_f32 (16,H))."""
    (w1, b1, g1, be1, w2, b2, g2, be2, w3, b3, g3, be3, w4, b4) = params
    del b1, b2, b3  # exact no-ops under training-mode BatchNorm (mean-subtracted)

    S, H = w1.shape
    A = w4.shape[1]
    assert A == 1, "quantization branch (x[1] scalar) requires action_dim == 1"

    w23 = jnp.concatenate([w2, w3], axis=1).astype(jnp.bfloat16)   # (H, 2H)
    w4t = jnp.transpose(w4)                                        # (1, H)
    b4_row = jnp.broadcast_to(b4.reshape(1, -1)[:, 0:1], (1, H))   # (1, H)

    slab = jnp.concatenate(
        [w1, w4t, g1, be1, g2, be2, g3, be3, b4_row], axis=0).astype(jnp.float32)
    n_rows = slab.shape[0]                                         # S + 8
    total = max(16, ((n_rows + 7) // 8) * 8)                       # sublane-align
    if total > n_rows:
        slab = jnp.concatenate(
            [slab, jnp.zeros((total - n_rows, H), jnp.float32)], axis=0)
    return w23, slab


@jax.jit
def actor_forward(x, w23, slab):
    B, _ = x.shape
    action_dim = 1  # enforced in prepare_params

    vmem = pl.BlockSpec(memory_space=pltpu.MemorySpace.VMEM)
    # ~70 KB of VMEM total and a single step: no grid, no tiling, no pipeline.
    return pl.pallas_call(
        actor_kernel,
        out_shape=jax.ShapeDtypeStruct((B, action_dim), jnp.float32),
        in_specs=[vmem, vmem, vmem],
        out_specs=vmem,
    )(x, slab, w23)


def init_params(key, state_dim, action_dim):
    """Deterministic synthetic parameters (PyTorch-Linear-style uniform init)."""
    def linear(key, fan_in, fan_out):
        k1, k2 = jax.random.split(key)
        bound = 1.0 / jnp.sqrt(fan_in)
        w = jax.random.uniform(k1, (fan_in, fan_out), jnp.float32, -bound, bound)
        b = jax.random.uniform(k2, (1, fan_out), jnp.float32, -bound, bound)
        return w, b

    k1, k2, k3, k4 = jax.random.split(key, 4)
    w1, b1 = linear(k1, state_dim, HIDDEN)
    w2, b2 = linear(k2, HIDDEN, HIDDEN)
    w3, b3 = linear(k3, HIDDEN, HIDDEN)
    w4, b4 = linear(k4, HIDDEN, action_dim)

    ones = jnp.ones((1, HIDDEN), jnp.float32)
    zeros = jnp.zeros((1, HIDDEN), jnp.float32)
    # BatchNorm affine params: gamma=1, beta=0 (PyTorch default init).
    return (w1, b1, ones, zeros,
            w2, b2, ones, zeros,
            w3, b3, ones, zeros,
            w4, b4)


if __name__ == "__main__":
    # Pendulum-like sizes: state_dim=3, action_dim=1; batch must be >= 2 for x[1].
    # (For throughput, callers should batch toward M=128/256 rows per call; the
    #  kernel is shape-agnostic in B.)
    state_dim, action_dim, batch = 3, 1, 8

    key = jax.random.PRNGKey(0)
    kx, kp = jax.random.split(key)
    x = jax.random.normal(kx, (batch, state_dim), jnp.float32)

    params = init_params(kp, state_dim, action_dim)
    w23, slab = prepare_params(params)          # one-time packing, outside jit
    w23, slab = jax.block_until_ready((w23, slab))

    out = actor_forward(x, w23, slab)
    out = jax.block_until_ready(out)
    assert out.shape == (batch, action_dim)
    print("KERNEL_OK")
</pallas_src>

<mosaic_0001>
module attributes {stable_mosaic.version = 11 : i64} {
  func.func @actor_kernel(%arg0: memref<8x3xf32, #tpu.memory_space<vmem>>, %arg1: memref<16x128xf32, #tpu.memory_space<vmem>>, %arg2: memref<128x256xbf16, #tpu.memory_space<vmem>>, %arg3: memref<8x1xf32, #tpu.memory_space<vmem>>) attributes {dimension_semantics = [], scalar_prefetch = 0 : i64, scratch_operands = 0 : i64, tpu.core_type = #tpu.core_type<tc>} {
    %c0 = arith.constant 0 : index
    %c0_0 = arith.constant 0 : index
    %0 = vector.load %arg0[%c0, %c0_0] : memref<8x3xf32, #tpu.memory_space<vmem>>, vector<8x3xf32>
    %c0_1 = arith.constant 0 : index
    %c0_2 = arith.constant 0 : index
    %1 = vector.load %arg1[%c0_1, %c0_2] : memref<16x128xf32, #tpu.memory_space<vmem>>, vector<16x128xf32>
    %2 = vector.extract_strided_slice %1 {offsets = [0, 0], sizes = [3, 128], strides = [1, 1]} : vector<16x128xf32> to vector<3x128xf32>
    %3 = vector.extract_strided_slice %1 {offsets = [3, 0], sizes = [1, 128], strides = [1, 1]} : vector<16x128xf32> to vector<1x128xf32>
    %4 = vector.extract_strided_slice %1 {offsets = [4, 0], sizes = [1, 128], strides = [1, 1]} : vector<16x128xf32> to vector<1x128xf32>
    %5 = vector.extract_strided_slice %1 {offsets = [5, 0], sizes = [1, 128], strides = [1, 1]} : vector<16x128xf32> to vector<1x128xf32>
    %6 = vector.extract_strided_slice %1 {offsets = [6, 0], sizes = [1, 128], strides = [1, 1]} : vector<16x128xf32> to vector<1x128xf32>
    %7 = vector.extract_strided_slice %1 {offsets = [7, 0], sizes = [1, 128], strides = [1, 1]} : vector<16x128xf32> to vector<1x128xf32>
    %8 = vector.extract_strided_slice %1 {offsets = [8, 0], sizes = [1, 128], strides = [1, 1]} : vector<16x128xf32> to vector<1x128xf32>
    %9 = vector.extract_strided_slice %1 {offsets = [9, 0], sizes = [1, 128], strides = [1, 1]} : vector<16x128xf32> to vector<1x128xf32>
    %10 = vector.extract_strided_slice %1 {offsets = [10, 0], sizes = [1, 1], strides = [1, 1]} : vector<16x128xf32> to vector<1x1xf32>
    %11 = vector.extract_strided_slice %0 {offsets = [0, 0], sizes = [8, 1], strides = [1, 1]} : vector<8x3xf32> to vector<8x1xf32>
    %12 = vector.extract_strided_slice %2 {offsets = [0, 0], sizes = [1, 128], strides = [1, 1]} : vector<3x128xf32> to vector<1x128xf32>
    %13 = vector.broadcast %11 : vector<8x1xf32> to vector<8x128xf32>
    %14 = vector.broadcast %12 : vector<1x128xf32> to vector<8x128xf32>
    %15 = arith.mulf %13, %14 : vector<8x128xf32>
    %16 = vector.extract_strided_slice %0 {offsets = [0, 1], sizes = [8, 1], strides = [1, 1]} : vector<8x3xf32> to vector<8x1xf32>
    %17 = vector.extract_strided_slice %2 {offsets = [1, 0], sizes = [1, 128], strides = [1, 1]} : vector<3x128xf32> to vector<1x128xf32>
    %18 = vector.broadcast %16 : vector<8x1xf32> to vector<8x128xf32>
    %19 = vector.broadcast %17 : vector<1x128xf32> to vector<8x128xf32>
    %20 = arith.mulf %18, %19 : vector<8x128xf32>
    %21 = arith.addf %15, %20 : vector<8x128xf32>
    %22 = vector.extract_strided_slice %0 {offsets = [0, 2], sizes = [8, 1], strides = [1, 1]} : vector<8x3xf32> to vector<8x1xf32>
    %23 = vector.extract_strided_slice %2 {offsets = [2, 0], sizes = [1, 128], strides = [1, 1]} : vector<3x128xf32> to vector<1x128xf32>
    %24 = vector.broadcast %22 : vector<8x1xf32> to vector<8x128xf32>
    %25 = vector.broadcast %23 : vector<1x128xf32> to vector<8x128xf32>
    %26 = arith.mulf %24, %25 : vector<8x128xf32>
    %27 = arith.addf %21, %26 : vector<8x128xf32>
    %cst = arith.constant dense<0.000000e+00> : vector<128xf32>
    %28 = vector.multi_reduction <add>, %27, %cst [0] : vector<8x128xf32> to vector<128xf32>
    %29 = vector.shape_cast %28 : vector<128xf32> to vector<1x128xf32>
    %cst_3 = arith.constant 8.000000e+00 : f32
    %30 = vector.broadcast %cst_3 : f32 to vector<1x128xf32>
    %31 = arith.divf %29, %30 : vector<1x128xf32>
    %32 = arith.mulf %27, %27 : vector<8x128xf32>
    %cst_4 = arith.constant dense<0.000000e+00> : vector<128xf32>
    %33 = vector.multi_reduction <add>, %32, %cst_4 [0] : vector<8x128xf32> to vector<128xf32>
    %34 = vector.shape_cast %33 : vector<128xf32> to vector<1x128xf32>
    %cst_5 = arith.constant 8.000000e+00 : f32
    %35 = vector.broadcast %cst_5 : f32 to vector<1x128xf32>
    %36 = arith.divf %34, %35 : vector<1x128xf32>
    %37 = arith.mulf %31, %31 : vector<1x128xf32>
    %38 = arith.subf %36, %37 : vector<1x128xf32>
    %cst_6 = arith.constant 0.000000e+00 : f32
    %39 = vector.broadcast %cst_6 : f32 to vector<1x128xf32>
    %40 = arith.maximumf %38, %39 : vector<1x128xf32>
    %cst_7 = arith.constant 9.99999974E-6 : f32
    %41 = vector.broadcast %cst_7 : f32 to vector<1x128xf32>
    %42 = arith.addf %40, %41 : vector<1x128xf32>
    %43 = math.rsqrt %42 : vector<1x128xf32>
    %44 = arith.mulf %4, %43 : vector<1x128xf32>
    %45 = vector.broadcast %31 : vector<1x128xf32> to vector<8x128xf32>
    %46 = arith.subf %27, %45 : vector<8x128xf32>
    %47 = vector.broadcast %44 : vector<1x128xf32> to vector<8x128xf32>
    %48 = arith.mulf %46, %47 : vector<8x128xf32>
    %49 = vector.broadcast %5 : vector<1x128xf32> to vector<8x128xf32>
    %50 = arith.addf %48, %49 : vector<8x128xf32>
    %cst_8 = arith.constant 0.000000e+00 : f32
    %51 = vector.broadcast %cst_8 : f32 to vector<8x128xf32>
    %52 = arith.maximumf %50, %51 : vector<8x128xf32>
    %53 = arith.truncf %52 : vector<8x128xf32> to vector<8x128xbf16>
    %c0_9 = arith.constant 0 : index
    %c0_10 = arith.constant 0 : index
    %54 = vector.load %arg2[%c0_9, %c0_10] : memref<128x256xbf16, #tpu.memory_space<vmem>>, vector<128x128xbf16>
    %cst_11 = arith.constant dense<0.000000e+00> : vector<8x128xf32>
    %55 = tpu.matmul %53, %54, %cst_11 {dimension_numbers = #tpu.dot_dimension_numbers<[1], [0], [0], [1], [0, 0, 1, 1], [], []>} : vector<8x128xbf16>, vector<128x128xbf16>, vector<8x128xf32> -> vector<8x128xf32>
    %cst_12 = arith.constant dense<0.000000e+00> : vector<128xf32>
    %56 = vector.multi_reduction <add>, %55, %cst_12 [0] : vector<8x128xf32> to vector<128xf32>
    %57 = vector.shape_cast %56 : vector<128xf32> to vector<1x128xf32>
    %cst_13 = arith.constant 8.000000e+00 : f32
    %58 = vector.broadcast %cst_13 : f32 to vector<1x128xf32>
    %59 = arith.divf %57, %58 : vector<1x128xf32>
    %60 = arith.mulf %55, %55 : vector<8x128xf32>
    %cst_14 = arith.constant dense<0.000000e+00> : vector<128xf32>
    %61 = vector.multi_reduction <add>, %60, %cst_14 [0] : vector<8x128xf32> to vector<128xf32>
    %62 = vector.shape_cast %61 : vector<128xf32> to vector<1x128xf32>
    %cst_15 = arith.constant 8.000000e+00 : f32
    %63 = vector.broadcast %cst_15 : f32 to vector<1x128xf32>
    %64 = arith.divf %62, %63 : vector<1x128xf32>
    %65 = arith.mulf %59, %59 : vector<1x128xf32>
    %66 = arith.subf %64, %65 : vector<1x128xf32>
    %cst_16 = arith.constant 0.000000e+00 : f32
    %67 = vector.broadcast %cst_16 : f32 to vector<1x128xf32>
    %68 = arith.maximumf %66, %67 : vector<1x128xf32>
    %cst_17 = arith.constant 9.99999974E-6 : f32
    %69 = vector.broadcast %cst_17 : f32 to vector<1x128xf32>
    %70 = arith.addf %68, %69 : vector<1x128xf32>
    %71 = math.rsqrt %70 : vector<1x128xf32>
    %72 = arith.mulf %6, %71 : vector<1x128xf32>
    %73 = vector.broadcast %59 : vector<1x128xf32> to vector<8x128xf32>
    %74 = arith.subf %55, %73 : vector<8x128xf32>
    %75 = vector.broadcast %72 : vector<1x128xf32> to vector<8x128xf32>
    %76 = arith.mulf %74, %75 : vector<8x128xf32>
    %77 = vector.broadcast %7 : vector<1x128xf32> to vector<8x128xf32>
    %78 = arith.addf %76, %77 : vector<8x128xf32>
    %cst_18 = arith.constant 0.000000e+00 : f32
    %79 = vector.broadcast %cst_18 : f32 to vector<8x128xf32>
    %80 = arith.maximumf %78, %79 : vector<8x128xf32>
    %81 = arith.truncf %80 : vector<8x128xf32> to vector<8x128xbf16>
    %c0_19 = arith.constant 0 : index
    %c128 = arith.constant 128 : index
    %82 = vector.load %arg2[%c0_19, %c128] : memref<128x256xbf16, #tpu.memory_space<vmem>>, vector<128x128xbf16>
    %cst_20 = arith.constant dense<0.000000e+00> : vector<8x128xf32>
    %83 = tpu.matmul %81, %82, %cst_20 {dimension_numbers = #tpu.dot_dimension_numbers<[1], [0], [0], [1], [0, 0, 1, 1], [], []>} : vector<8x128xbf16>, vector<128x128xbf16>, vector<8x128xf32> -> vector<8x128xf32>
    %cst_21 = arith.constant dense<0.000000e+00> : vector<128xf32>
    %84 = vector.multi_reduction <add>, %83, %cst_21 [0] : vector<8x128xf32> to vector<128xf32>
    %85 = vector.shape_cast %84 : vector<128xf32> to vector<1x128xf32>
    %cst_22 = arith.constant 8.000000e+00 : f32
    %86 = vector.broadcast %cst_22 : f32 to vector<1x128xf32>
    %87 = arith.divf %85, %86 : vector<1x128xf32>
    %88 = arith.mulf %83, %83 : vector<8x128xf32>
    %cst_23 = arith.constant dense<0.000000e+00> : vector<128xf32>
    %89 = vector.multi_reduction <add>, %88, %cst_23 [0] : vector<8x128xf32> to vector<128xf32>
    %90 = vector.shape_cast %89 : vector<128xf32> to vector<1x128xf32>
    %cst_24 = arith.constant 8.000000e+00 : f32
    %91 = vector.broadcast %cst_24 : f32 to vector<1x128xf32>
    %92 = arith.divf %90, %91 : vector<1x128xf32>
    %93 = arith.mulf %87, %87 : vector<1x128xf32>
    %94 = arith.subf %92, %93 : vector<1x128xf32>
    %cst_25 = arith.constant 0.000000e+00 : f32
    %95 = vector.broadcast %cst_25 : f32 to vector<1x128xf32>
    %96 = arith.maximumf %94, %95 : vector<1x128xf32>
    %cst_26 = arith.constant 9.99999974E-6 : f32
    %97 = vector.broadcast %cst_26 : f32 to vector<1x128xf32>
    %98 = arith.addf %96, %97 : vector<1x128xf32>
    %99 = math.rsqrt %98 : vector<1x128xf32>
    %100 = arith.mulf %8, %99 : vector<1x128xf32>
    %101 = vector.broadcast %87 : vector<1x128xf32> to vector<8x128xf32>
    %102 = arith.subf %83, %101 : vector<8x128xf32>
    %103 = vector.broadcast %100 : vector<1x128xf32> to vector<8x128xf32>
    %104 = arith.mulf %102, %103 : vector<8x128xf32>
    %105 = vector.broadcast %9 : vector<1x128xf32> to vector<8x128xf32>
    %106 = arith.addf %104, %105 : vector<8x128xf32>
    %cst_27 = arith.constant 0.000000e+00 : f32
    %107 = vector.broadcast %cst_27 : f32 to vector<8x128xf32>
    %108 = arith.maximumf %106, %107 : vector<8x128xf32>
    %109 = vector.broadcast %3 : vector<1x128xf32> to vector<8x128xf32>
    %110 = arith.mulf %108, %109 : vector<8x128xf32>
    %cst_28 = arith.constant dense<0.000000e+00> : vector<8xf32>
    %111 = vector.multi_reduction <add>, %110, %cst_28 [1] : vector<8x128xf32> to vector<8xf32>
    %112 = vector.shape_cast %111 : vector<8xf32> to vector<8x1xf32>
    %113 = vector.broadcast %10 : vector<1x1xf32> to vector<8x1xf32>
    %114 = arith.addf %112, %113 : vector<8x1xf32>
    %cst_29 = arith.constant 0.000000e+00 : f32
    %115 = vector.broadcast %cst_29 : f32 to vector<8x1xf32>
    %116 = arith.subf %115, %114 : vector<8x1xf32>
    %117 = math.exp %116 : vector<8x1xf32>
    %cst_30 = arith.constant 1.000000e+00 : f32
    %118 = vector.broadcast %cst_30 : f32 to vector<8x1xf32>
    %119 = arith.addf %118, %117 : vector<8x1xf32>
    %cst_31 = arith.constant 1.000000e+00 : f32
    %120 = vector.broadcast %cst_31 : f32 to vector<8x1xf32>
    %121 = arith.divf %120, %119 : vector<8x1xf32>
    %cst_32 = arith.constant 2.500000e-01 : f32
    %122 = vector.broadcast %cst_32 : f32 to vector<8x1xf32>
    %123 = arith.cmpf olt, %121, %122 : vector<8x1xf32>
    %cst_33 = arith.constant 5.000000e-01 : f32
    %124 = vector.broadcast %cst_33 : f32 to vector<8x1xf32>
    %125 = arith.cmpf olt, %121, %124 : vector<8x1xf32>
    %cst_34 = arith.constant 7.500000e-01 : f32
    %126 = vector.broadcast %cst_34 : f32 to vector<8x1xf32>
    %127 = arith.cmpf olt, %121, %126 : vector<8x1xf32>
    %cst_35 = arith.constant 7.500000e-01 : f32
    %cst_36 = arith.constant 1.000000e+00 : f32
    %128 = vector.broadcast %cst_35 : f32 to vector<8x1xf32>
    %129 = vector.broadcast %cst_36 : f32 to vector<8x1xf32>
    %130 = arith.select %127, %128, %129 : vector<8x1xi1>, vector<8x1xf32>
    %cst_37 = arith.constant 5.000000e-01 : f32
    %131 = vector.broadcast %cst_37 : f32 to vector<8x1xf32>
    %132 = arith.select %125, %131, %130 : vector<8x1xi1>, vector<8x1xf32>
    %cst_38 = arith.constant 2.500000e-01 : f32
    %133 = vector.broadcast %cst_38 : f32 to vector<8x1xf32>
    %134 = arith.select %123, %133, %132 : vector<8x1xi1>, vector<8x1xf32>
    %135 = tpu.iota {dimensions = array<i32: 0>} : vector<8x1xi32>
    %c1_i32 = arith.constant 1 : i32
    %136 = vector.broadcast %c1_i32 : i32 to vector<8x1xi32>
    %137 = arith.cmpi eq, %135, %136 : vector<8x1xi32>
    %138 = arith.select %137, %134, %121 : vector<8x1xi1>, vector<8x1xf32>
    %c0_39 = arith.constant 0 : index
    %c0_40 = arith.constant 0 : index
    %139 = vector.load %arg3[%c0_39, %c0_40] : memref<8x1xf32, #tpu.memory_space<vmem>>, vector<8x1xf32>
    tpu.vector_store %arg3[%c0_39, %c0_40], %138 {strides = array<i32>} : memref<8x1xf32, #tpu.memory_space<vmem>>, vector<8x1xf32>,
    return
  }
}

</mosaic_0001>

<bundles_post_ra>
// kernel: actor_forward.1
= control target key start
LH: loop header
LB: loop body
LE: loop exit
PB: predicated region body
PF: predicated region fallthrough
CT: control target
= control target key end

     0   :  { %8 = vsyncpa [#allocation3], 0  ;;  %s673_s0 = inlined_call_operand.vmem [shape: f32[8,3], index: 0, kind: input, shape index: {}]   ;;  %s674_s1 = inlined_call_operand.hbm [shape: f32[16,128], index: 1, kind: input, shape index: {}]   ;;  %s675_s2 = inlined_call_operand.hbm [shape: bf16[128,256], index: 2, kind: input, shape index: {}]   ;;  %s676_s3 = inlined_call_operand.vmem [shape: f32[8,1], index: 3, kind: output, shape index: {}]  }
   0x1   :  { %9 = vsyncpa [#allocation5], 0  ;;  %s580_s12 = smov [#allocation2]  }
   0x2   :  { %s17_s13 = sshll.u32 %s580_s12, 4  ;;  %s18_s13 = int_to_ptr.vmem [resolvable:$true] %s17_s13 }
   0x3   :  { %s544_s14 = scalar_lea.vmem %s18_s13, 256  ;;  %p549_p1 = scmp.lt.s32.totalorder %s18_s13, %s18_s13 }
   0x4   :  { %p545_p0 = scmp.ne.s32.totalorder %s18_s13, %s544_s14  ;;  %p550_p2 = scmp.lt.s32.totalorder %s544_s14, %s544_s14 }
   0x6   :  { %p551_p3 = por %p550_p2, %p549_p1 }
   0x8   :  { %p552_p4 = pnand %p551_p3, %p545_p0 }
   0xa   :  { %555 = shalt.err (!%p552_p4)
}
   0xb   :  { %s581_s15 = smov 128   ;;  %s582_s16 = smov 8  }
   0xc   :  { %23 = dma.hbm_to_vmem [thread:$0]  %s674_s1, 256, %s18_s13, [#allocation3], %s581_s15, %s581_s15, %s582_s16  }
   0xd   :  { %s583_s19 = smov [#allocation4]  }
   0xe   :  { %s29_s20 = sshll.u32 %s583_s19, 4  ;;  %s30_s20 = int_to_ptr.vmem [resolvable:$true] %s29_s20 }
   0xf   :  { %s564_s21 = scalar_lea.vmem %s30_s20, 2048  ;;  %p569_p6 = scmp.lt.s32.totalorder %s30_s20, %s30_s20 }
  0x10   :  { %p565_p5 = scmp.ne.s32.totalorder %s30_s20, %s564_s21  ;;  %p570_p7 = scmp.lt.s32.totalorder %s564_s21, %s564_s21 }
  0x12   :  { %p571_p8 = por %p570_p7, %p569_p6 }
  0x14   :  { %p572_p9 = pnand %p571_p8, %p565_p5 }
  0x16   :  { %575 = shalt.err (!%p572_p9)
}
  0x17   :  { %35 = dma.hbm_to_vmem [thread:$0]  %s675_s2, 2048, %s30_s20, [#allocation5], %s581_s15, %s581_s15, %s582_s16  }
  0x18   :  { %576 = dma.done.wait [#allocation3], 256  }
  0x19   :  { %577 = vsyncadd [#allocation3], 4294967040 }
  0x1a   :  { %578 = dma.done.wait [#allocation5], 2048  }
  0x1b   :  { %579 = vsyncadd [#allocation5], 4294965248  ;;  %v584_v0 = vmov 0   ;;  %v585_v1 = vmov 2   ;;  %v43_v2 = vld [vmem:[%s673_s0] sm:$0xff]  ;;  %v586_v3 = vmov 1   ;;  %v51_v13 = vlaneseq }
  0x1c   :  { %506 = vset.pattern.permute.xlu0 %v584_v0  ;;  %508 = vset.pattern.permute.xlu1 %v585_v1  ;;  %v510_v4 = vld [vmem:[#allocation4 + $0x70] ss:$8 sps:$4 sm:$0xff]   ;;  %v587_v5 = vmov 0.0   ;;  %vm588_vm0 = vmmov 0   ;;  %v511_v6 = vld [vmem:[#allocation4 + $0x60] ss:$8 sps:$4 sm:$0xff]  }
  0x1d   :  { %48 = vperm.xlu0 %506, %v43_v2   ;;  %67 = vperm.xlu1 %508, %v43_v2   ;;  %v512_v7 = vld [vmem:[#allocation4 + $0x50] ss:$8 sps:$4 sm:$0xff]   ;;  %v513_v8 = vld [vmem:[#allocation4 + $0x40] ss:$8 sps:$4 sm:$0xff]   ;;  %v630_v14 = vshrl.u32 %v51_v13, 7  ;;  %vm414_vm4 = vcmask 7168  }
  0x1e   :  { %456 = vmatprep.subr.bf16.mxu0 %v587_v5  ;;  %472 = vmatprep.mubr.msk.bf16.mxu0 %vm588_vm0, %v587_v5  ;;  %v514_v9 = vld [vmem:[#allocation4 + $0x30] ss:$8 sps:$4 sm:$0xff]   ;;  %v515_v10 = vld [vmem:[#allocation4 + $0x20] ss:$8 sps:$4 sm:$0xff]   ;;  %v518_v60 = vld [vmem:[#allocation4 + $0x74] ss:$8 sps:$4 sm:$0xff]  }
  0x1f   :  { %457 = vmatpush3.bf16.msra.mxu0 %v510_v4  ;;  %476 = vmatprep.subr.bf16.mxu1 %v587_v5  ;;  %v516_v11 = vld [vmem:[#allocation4 + $0x10] ss:$8 sps:$4 sm:$0xff]   ;;  %v517_v12 = vld [vmem:[#allocation4] ss:$8 sps:$4 sm:$0xff]   ;;  %v53_v15 = vsub.s32 0, %v630_v14  ;;  %v62_v16 = vsub.s32 1, %v630_v14 }
  0x20   :  { %458 = vmatprep.subr.bf16.mxu0 %v587_v5  ;;  %492 = vmatprep.mubr.msk.bf16.mxu1 %vm588_vm0, %v587_v5  ;;  %v72_v17 = vsub.s32 2, %v630_v14  ;;  %v635_v18 = vld [vmem:[#allocation2] sm:$0xff]  ;;  %v101_v49 = vsub.s32 4, %v630_v14  ;;  %v106_v50 = vsub.s32 5, %v630_v14  ;;  %v519_v61 = vld [vmem:[#allocation4 + $0x64] ss:$8 sps:$4 sm:$0xff]  }
  0x21   :  { %507 = vset.pattern.permute.xlu0 %v586_v3  ;;  %v54_v20 = vrot.slane %v635_v18, %v53_v15  ;;  %v63_v21 = vrot.slane %v635_v18, %v62_v16  ;;  %477 = vmatpush3.bf16.msra.mxu1 %v518_v60  ;;  %v520_v62 = vld [vmem:[#allocation4 + $0x54] ss:$8 sps:$4 sm:$0xff]   ;;  %v521_v63 = vld [vmem:[#allocation4 + $0x44] ss:$8 sps:$4 sm:$0xff]   ;;  %vm412_vm3 = vcmp.eq.s32.totalorder %v630_v14, 1 }
  0x22   :  { %57 = vperm.xlu0 %507, %v43_v2   ;;  %v73_v22 = vrot.slane %v635_v18, %v72_v17  ;;  %v107_v55 = vrot.slane %v635_v18, %v106_v50  ;;  %478 = vmatprep.subr.bf16.mxu1 %v587_v5  ;;  %v522_v0 = vld [vmem:[#allocation4 + $0x34] ss:$8 sps:$4 sm:$0xff]   ;;  %v525_v3 = vld [vmem:[#allocation4 + $0x4] ss:$8 sps:$4 sm:$0xff]  }
  0x23   :  { %459 = vmatpush3.bf16.msra.mxu0 %v511_v6  ;;  %v524_v2 = vld [vmem:[#allocation4 + $0x14] ss:$8 sps:$4 sm:$0xff]  }
  0x24   :  { %460 = vmatprep.subr.bf16.mxu0 %v587_v5 }
  0x25   :  { %479 = vmatpush3.bf16.msra.mxu1 %v519_v61 }
  0x26   :  { %509 = vset.pattern.permute.xlu0 %v585_v1  ;;  %480 = vmatprep.subr.bf16.mxu1 %v587_v5  ;;  %v523_v1 = vld [vmem:[#allocation4 + $0x24] ss:$8 sps:$4 sm:$0xff]  }
  0x27   :  { %461 = vmatpush3.bf16.msra.mxu0 %v512_v7 }
  0x28   :  { %462 = vmatprep.subr.bf16.mxu0 %v587_v5 }
  0x29   :  { %481 = vmatpush3.bf16.msra.mxu1 %v520_v62 }
  0x2a   :  { %482 = vmatprep.subr.bf16.mxu1 %v587_v5 }
  0x2b   :  { %463 = vmatpush3.bf16.msra.mxu0 %v513_v8 }
  0x2c   :  { %464 = vmatprep.subr.bf16.mxu0 %v587_v5 }
  0x2d   :  { %483 = vmatpush3.bf16.msra.mxu1 %v521_v63 }
  0x2e   :  { %484 = vmatprep.subr.bf16.mxu1 %v587_v5 }
  0x2f   :  { %465 = vmatpush3.bf16.msra.mxu0 %v514_v9 }
  0x30   :  { %466 = vmatprep.subr.bf16.mxu0 %v587_v5 }
  0x31   :  { %485 = vmatpush3.bf16.msra.mxu1 %v522_v0 }
  0x32   :  { %486 = vmatprep.subr.bf16.mxu1 %v587_v5 }
  0x33   :  { %467 = vmatpush3.bf16.msra.mxu0 %v515_v10 }
  0x34   :  { %468 = vmatprep.subr.bf16.mxu0 %v587_v5 }
  0x35   :  { %487 = vmatpush3.bf16.msra.mxu1 %v523_v1 }
  0x36   :  { %488 = vmatprep.subr.bf16.mxu1 %v587_v5 }
  0x37   :  { %469 = vmatpush3.bf16.msra.mxu0 %v516_v11 }
  0x38   :  { %470 = vmatprep.subr.bf16.mxu0 %v587_v5 }
  0x39   :  { %489 = vmatpush3.bf16.msra.mxu1 %v524_v2  ;;  %v45_v2 = vld [vmem:[#allocation2 + $0x8] sm:$0xff] }
  0x3a   :  { %490 = vmatprep.subr.bf16.mxu1 %v587_v5 }
  0x3b   :  { %471 = vmatpush3.bf16.msra.mxu0 %v517_v12 }
  0x3d   :  { %491 = vmatpush3.bf16.msra.mxu1 %v525_v3 }
  0x98   :  { %v49_v19 = vpop.permute.xlu0 %48  ;;  %v68_v23 = vpop.permute.xlu1 %67 }
  0x99   :  { %v55_v25 = vmul.f32 %v54_v20, %v49_v19  ;;  %v74_v27 = vmul.f32 %v73_v22, %v68_v23 }
  0x9d   :  { %v58_v24 = vpop.permute.xlu0 %57 }
  0x9e   :  { %v64_v26 = vmul.f32 %v63_v21, %v58_v24 }
  0xa0   :  { %v65_v28 = vadd.f32 %v64_v26, %v55_v25 }
  0xa2   :  { %v75_v29 = vadd.f32 %v74_v27, %v65_v28 }
  0xa4   :  { %v76_v30 = vrot.slane %v75_v29, 4  ;;  %v84_v31 = vmul.f32 %v75_v29, %v75_v29 }
  0xa6   :  { %v77_v32 = vadd.f32 %v76_v30, %v75_v29  ;;  %v85_v33 = vrot.slane %v84_v31, 4 }
  0xa8   :  { %v78_v34 = vrot.slane %v77_v32, 2  ;;  %v86_v35 = vadd.f32 %v85_v33, %v84_v31  ;;  %v244_v33 = vsub.s32 7, %v630_v14 }
  0xaa   :  { %v79_v36 = vadd.f32 %v78_v34, %v77_v32  ;;  %v87_v37 = vrot.slane %v86_v35, 2  ;;  %v239_v32 = vsub.s32 6, %v630_v14 }
  0xac   :  { %v88_v38 = vadd.f32 %v87_v37, %v86_v35  ;;  %v80_v39 = vrot.slane %v79_v36, 1 }
  0xae   :  { %v89_v40 = vrot.slane %v88_v38, 1  ;;  %v81_v41 = vadd.f32 %v80_v39, %v79_v36 }
  0xb0   :  { %v90_v42 = vadd.f32 %v89_v40, %v88_v38  ;;  %v83_v43 = vmul.f32 0.125, %v81_v41  ;;  %v245_v38 = vrot.slane %v635_v18, %v244_v33 }
  0xb2   :  { %v91_v44 = vmul.f32 0.125, %v90_v42  ;;  %v92_v45 = vmul.f32 %v83_v43, %v83_v43  ;;  %v98_v53 = vsub.f32 %v75_v29, %v83_v43 }
  0xb4   :  { %v93_v46 = vsub.f32 %v91_v44, %v92_v45 }
  0xb6   :  { %v94_v47 = vmax.f32 %v93_v46, 0.0 }
  0xb8   :  { %v95_v48 = vadd.f32 1e-05, %v94_v47 }
  0xba   :  { %526 = vrsqrt.f32 %v95_v48 }
  0xc7   :  { %v527_v51 = vpop.eup %526 }
  0xc8   :  { %v97_v52 = vmul.f32 %v527_v51, %v635_v18 }
  0xca   :  { %v102_v54 = vrot.slane %v97_v52, %v101_v49 }
  0xcc   :  { %v103_v56 = vmul.f32 %v102_v54, %v98_v53 }
  0xce   :  { %v108_v57 = vadd.f32 %v107_v55, %v103_v56 }
  0xd0   :  { %v109_v58 = vmax.f32 %v108_v57, 0.0 }
  0xd2   :  { %v110_v59 = vpack.c.bf16 %v109_v58, %v109_v58 }
  0xd4   :  { %473 = vmatmul.mubr.bf16.vlgmr.msra.gmra.mxu0 %v110_v59 }
 0x194   :  { %v209_v4 = vpop.f32.mrf.mxu0 }
 0x195   :  { %v215_v6 = vrot.slane %v209_v4, 4  ;;  %v222_v7 = vmul.f32 %v209_v4, %v209_v4 }
 0x196   :  { %v474_v8 = vpop.f32.mrf.mxu0 }
 0x197   :  { %v216_v9 = vadd.f32 %v215_v6, %v209_v4  ;;  %v223_v10 = vrot.slane %v222_v7, 4  ;;  %v383_v8 = vrot.slane %v45_v2, %v62_v16 }
 0x198   :  { %v212_v11 = vpop.f32.mrf.mxu0 }
 0x199   :  { %v217_v12 = vrot.slane %v216_v9, 2  ;;  %v224_v13 = vadd.f32 %v223_v10, %v222_v7 }
 0x19a   :  { %v475_v19 = vpop.f32.mrf.mxu0 }
 0x19b   :  { %v218_v20 = vadd.f32 %v217_v12, %v216_v9  ;;  %v225_v21 = vrot.slane %v224_v13, 2  ;;  %v388_v9 = vsub.s32 3, %v630_v14 }
 0x19d   :  { %v219_v22 = vrot.slane %v218_v20, 1  ;;  %v226_v23 = vadd.f32 %v225_v21, %v224_v13  ;;  %v389_v12 = vrot.slane %v635_v18, %v388_v9 }
 0x19f   :  { %v220_v24 = vadd.f32 %v219_v22, %v218_v20  ;;  %v227_v25 = vrot.slane %v226_v23, 1  ;;  %v396_v20 = vrot.slane %v45_v2, %v72_v17 }
 0x1a1   :  { %v221_v26 = vmul.f32 0.125, %v220_v24  ;;  %v228_v27 = vadd.f32 %v227_v25, %v226_v23 }
 0x1a3   :  { %v229_v5 = vmul.f32 0.125, %v228_v27  ;;  %v230_v28 = vmul.f32 %v221_v26, %v221_v26  ;;  %v236_v36 = vsub.f32 %v209_v4, %v221_v26 }
 0x1a5   :  { %v231_v29 = vsub.f32 %v229_v5, %v230_v28 }
 0x1a7   :  { %v232_v30 = vmax.f32 %v231_v29, 0.0 }
 0x1a9   :  { %v233_v31 = vadd.f32 1e-05, %v232_v30 }
 0x1ab   :  { %528 = vrsqrt.f32 %v233_v31 }
 0x1b8   :  { %v529_v34 = vpop.eup %528 }
 0x1b9   :  { %v235_v35 = vmul.f32 %v529_v34, %v635_v18  ;;  %v589_v18 = vmov 1.0  }
 0x1bb   :  { %v240_v37 = vrot.slane %v235_v35, %v239_v32 }
 0x1bd   :  { %v241_v39 = vmul.f32 %v240_v37, %v236_v36 }
 0x1bf   :  { %v246_v40 = vadd.f32 %v245_v38, %v241_v39 }
 0x1c1   :  { %v247_v41 = vmax.f32 %v246_v40, 0.0 }
 0x1c3   :  { %v248_v42 = vpack.c.bf16 %v247_v41, %v247_v41 }
 0x1c5   :  { %493 = vmatmul.mubr.bf16.vlgmr.msra.gmra.mxu1 %v248_v42 }
 0x285   :  { %v347_v43 = vpop.f32.mrf.mxu1 }
 0x286   :  { %v353_v44 = vrot.slane %v347_v43, 4  ;;  %v360_v45 = vmul.f32 %v347_v43, %v347_v43 }
 0x287   :  { %v494_v46 = vpop.f32.mrf.mxu1 }
 0x288   :  { %v354_v47 = vadd.f32 %v353_v44, %v347_v43  ;;  %v361_v48 = vrot.slane %v360_v45, 4 }
 0x289   :  { %v350_v49 = vpop.f32.mrf.mxu1 }
 0x28a   :  { %v355_v50 = vrot.slane %v354_v47, 2  ;;  %v362_v51 = vadd.f32 %v361_v48, %v360_v45 }
 0x28b   :  { %v495_v52 = vpop.f32.mrf.mxu1 }
 0x28c   :  { %v356_v53 = vadd.f32 %v355_v50, %v354_v47  ;;  %v363_v54 = vrot.slane %v362_v51, 2 }
 0x28e   :  { %v357_v55 = vrot.slane %v356_v53, 1  ;;  %v364_v56 = vadd.f32 %v363_v54, %v362_v51 }
 0x290   :  { %v358_v57 = vadd.f32 %v357_v55, %v356_v53  ;;  %v365_v58 = vrot.slane %v364_v56, 1 }
 0x292   :  { %v359_v59 = vmul.f32 0.125, %v358_v57  ;;  %v366_v60 = vadd.f32 %v365_v58, %v364_v56 }
 0x294   :  { %v367_v61 = vmul.f32 0.125, %v366_v60  ;;  %v368_v62 = vmul.f32 %v359_v59, %v359_v59  ;;  %v374_v6 = vsub.f32 %v347_v43, %v359_v59 }
 0x296   :  { %v369_v63 = vsub.f32 %v367_v61, %v368_v62 }
 0x298   :  { %v370_v0 = vmax.f32 %v369_v63, 0.0 }
 0x29a   :  { %v371_v1 = vadd.f32 1e-05, %v370_v0 }
 0x29c   :  { %530 = vrsqrt.f32 %v371_v1 }
 0x2a9   :  { %v531_v3 = vpop.eup %530 }
 0x2aa   :  { %v373_v4 = vmul.f32 %v531_v3, %v45_v2 }
 0x2ac   :  { %v378_v7 = vrot.slane %v373_v4, %v53_v15 }
 0x2ae   :  { %v379_v10 = vmul.f32 %v378_v7, %v374_v6 }
 0x2b0   :  { %v384_v11 = vadd.f32 %v383_v8, %v379_v10 }
 0x2b2   :  { %v385_v13 = vmax.f32 %v384_v11, 0.0 }
 0x2b4   :  { %v390_v19 = vmul.f32 %v389_v12, %v385_v13 }
 0x2b6   :  { %391 = vadd.xlane.f32.xlu1 %v390_v19 }
 0x33f   :  { %v392_v21 = vpop.xlane.xlu1 %391 }
 0x340   :  { %v397_v22 = vadd.f32 %v396_v20, %v392_v21 }
 0x342   :  { %v398_v23 = vsub.f32 0.0, %v397_v22 }
 0x344   :  { %v399_v24 = vmul.f32 1.442695, %v398_v23 }
 0x346   :  { %532 = vpow2.f32 %v399_v24 }
 0x353   :  { %v533_v15 = vpop.eup %532 }
 0x354   :  { %v401_v25 = vadd.f32 1.0, %v533_v15 }
 0x356   :  { %534 = vrcp.f32 %v401_v25 }
 0x363   :  { %v535_v16 = vpop.eup %534 }
 0x364   :  { %vm405_vm1 = vcmp.lt.f32.partialorder %v535_v16, 0.5  ;;  %vm406_vm2 = vcmp.lt.f32.partialorder %v535_v16, 0.75  ;;  %vm404_vm5 = vcmp.lt.f32.partialorder %v535_v16, 0.25 }
 0x365   :  { %v407_v26 = vsel %vm406_vm2, 0.75, %v589_v18 }
 0x366   :  { %v408_v27 = vsel %vm405_vm1, 0.5, %v407_v26 }
 0x367   :  { %v409_v5 = vsel %vm404_vm5, 0.25, %v408_v27 }
 0x368   :  { %v413_v17 = vsel %vm412_vm3, %v409_v5, %v535_v16 }
 0x369   :  { %415 = vst.msk [vmem:[%s676_s3] sm:$0xff] %vm414_vm4, %v413_v17 }
 0x36a   :  { %420 = vsyncpa [#allocation3], 1 }
 0x36b   :  { %421 = vsyncpa [#allocation5], 1 }

</bundles_post_ra>
